<compile_context>
chip_gen: v7x
topology: tpu7x:2x2x1
jax: 0.10.0
libtpu: 0.0.40
codegen_flags: <defaults>
</compile_context>

<pallas_src>
import jax
import jax.numpy as jnp
from jax.experimental import pallas as pl
from jax.experimental.pallas import tpu as pltpu

EPS = 1e-5  # nn.BatchNorm1d default eps


def _vmem_capacity_bytes():
    try:
        return int(pltpu.get_tpu_info().vmem_capacity_bytes)
    except Exception:
        return 64 * 1024 * 1024  # conservative (v7x per-core VMEM)


# ----------------------------------------------------------------------------
# Fused single-pass kernel: whole packed slab resident in VMEM.
# ----------------------------------------------------------------------------
def _make_fused_kernel(m_rows, groups, n_feat, n_lanes, needs_mask):
    inv_n = 1.0 / float(m_rows)

    def fused_kernel(x_ref, gamma_ref, beta_ref, o_ref):
        x = x_ref[...].astype(jnp.float32)                       # (mp, n_lanes)
        if needs_mask:
            row = jax.lax.broadcasted_iota(jnp.int32, x.shape, 0)
            lane = jax.lax.broadcasted_iota(jnp.int32, x.shape, 1)
            valid = (row * groups + lane // n_feat) < m_rows
            xs = jnp.where(valid, x, 0.0)
        else:
            valid = None
            xs = x

        # Per-feature sum: per-lane reduce, then combine the lane-groups with
        # log-step rotate-and-add on the XLU (groups is a power of two).
        s = jnp.sum(xs, axis=0, keepdims=True)                   # (1, n_lanes)
        sh = n_feat
        while sh < n_lanes:
            s = s + pltpu.roll(s, sh, axis=1)
            sh *= 2
        mean = s * inv_n                                         # per feature

        # Exact centered second moment (slab is resident -> free second sweep).
        xc = x - mean
        if needs_mask:
            xc = jnp.where(valid, xc, 0.0)
        ss = jnp.sum(xc * xc, axis=0, keepdims=True)
        sh = n_feat
        while sh < n_lanes:
            ss = ss + pltpu.roll(ss, sh, axis=1)
            sh *= 2
        var = jnp.maximum(ss * inv_n, 0.0)                       # biased var
        inv_std = jax.lax.rsqrt(var + EPS)

        scale = gamma_ref[...] * inv_std
        shift = beta_ref[...] - mean * scale
        o_ref[...] = (x * scale + shift).astype(o_ref.dtype)

    return fused_kernel


def _bn_fused(x2, gamma_row, beta_row, m_rows, groups, n_feat, vmem_budget):
    mp, n_lanes = x2.shape
    needs_mask = (mp * groups) != m_rows
    kernel = _make_fused_kernel(m_rows, groups, n_feat, n_lanes, needs_mask)
    return pl.pallas_call(
        kernel,
        out_shape=jax.ShapeDtypeStruct((mp, n_lanes), x2.dtype),
        in_specs=[pl.BlockSpec(memory_space=pltpu.MemorySpace.VMEM)] * 3,
        out_specs=pl.BlockSpec(memory_space=pltpu.MemorySpace.VMEM),
        compiler_params=pltpu.CompilerParams(vmem_limit_bytes=int(vmem_budget)),
    )(x2, gamma_row, beta_row)


# ----------------------------------------------------------------------------
# Tiled pass 1: per-slice pivot-shifted partial statistics.
#   outputs (per slice p, per lane): pivot, sum(x - pivot), sum((x-pivot)^2),
#   valid-sample count -- combined in a tiny jnp epilogue.
# ----------------------------------------------------------------------------
def _make_stats_kernel(tm, groups, n_feat, m_rows, needs_mask, n_tiles,
                       tiles_per_par):
    def stats_kernel(x_ref, piv_ref, s_ref, ss_ref, cnt_ref):
        p = pl.program_id(0)
        i = pl.program_id(1)
        x = x_ref[...].astype(jnp.float32)                       # (tm, n_lanes)

        @pl.when(i == 0)
        def _init():
            piv_ref[...] = x[0:1, :]          # first row of this slice = pivot
            s_ref[...] = jnp.zeros_like(s_ref)
            ss_ref[...] = jnp.zeros_like(ss_ref)
            cnt_ref[...] = jnp.zeros_like(cnt_ref)

        piv = piv_ref[...]
        gt = p * tiles_per_par + i                               # global tile

        def _accumulate(xv, cnt_inc):
            s_ref[...] += jnp.sum(xv, axis=0, keepdims=True)
            ss_ref[...] += jnp.sum(xv * xv, axis=0, keepdims=True)
            cnt_ref[...] += cnt_inc

        if needs_mask:
            is_last = gt == (n_tiles - 1)

            # Full tiles: no mask work at all.
            @pl.when(jnp.logical_not(is_last))
            def _full_tile():
                _accumulate(x - piv, jnp.float32(tm))

            # Only the final tile pays for the ragged/pad mask.
            @pl.when(is_last)
            def _masked_tile():
                row = jax.lax.broadcasted_iota(jnp.int32, x.shape, 0) + gt * tm
                lane = jax.lax.broadcasted_iota(jnp.int32, x.shape, 1)
                valid = (row * groups + lane // n_feat) < m_rows
                maskf = valid.astype(jnp.float32)
                _accumulate(jnp.where(valid, x - piv, 0.0),
                            jnp.sum(maskf, axis=0, keepdims=True))
        else:
            _accumulate(x - piv, jnp.float32(tm))

    return stats_kernel


# ----------------------------------------------------------------------------
# Tiled pass 2: y = x * scale + shift (2 VALU ops / element, scale/shift resident)
# ----------------------------------------------------------------------------
def _norm_kernel(x_ref, scale_ref, shift_ref, o_ref):
    xf = x_ref[...].astype(jnp.float32)
    o_ref[...] = (xf * scale_ref[...] + shift_ref[...]).astype(o_ref.dtype)


def _choose_tm(mp, n_lanes):
    # ~2 MiB f32 row tiles: per the tiling sweep, 1-2 MiB tiles reach ~85%+ of
    # the HBM roofline, while 256 KiB tiles leave per-grid-step overhead
    # dominant.  Multiple of 8 rows; whole array if it is smaller than that.
    target_bytes = 2 << 20
    tm = max(8, target_bytes // (n_lanes * 4))
    tm = max(8, (tm // 8) * 8)
    if tm >= mp:
        return mp
    return tm


def _bn_tiled(x2, gamma_f, beta_f, m_rows, groups, n_feat):
    mp, n_lanes = x2.shape
    tm = _choose_tm(mp, n_lanes)
    n_tiles = pl.cdiv(mp, tm)

    padded = (mp * groups) != m_rows
    ragged = (mp % tm) != 0
    needs_mask = padded or ragged

    # Split the row tiles into two slices so the stats sweep can use both
    # TensorCores on v7x (neutral on 1-TC v5e/v6e).  Requires an even tile
    # count and 128-aligned lanes (partials are packed along the lane axis).
    n_par = 2 if (n_tiles >= 2 and n_tiles % 2 == 0 and n_lanes % 128 == 0) else 1
    tiles_per_par = n_tiles // n_par

    tile_bytes = tm * n_lanes * 4
    vmem_limit = int(max(32 << 20, 6 * tile_bytes))   # keep double-buffering on v5e

    # ---- pass 1: partial statistics -------------------------------------
    stats_kernel = _make_stats_kernel(tm, groups, n_feat, m_rows, needs_mask,
                                      n_tiles, tiles_per_par)
    part_shape = jax.ShapeDtypeStruct((1, n_par * n_lanes), jnp.float32)
    part_spec = pl.BlockSpec((1, n_lanes), lambda p, i: (0, p))
    piv, s, ss, cnt = pl.pallas_call(
        stats_kernel,
        out_shape=(part_shape, part_shape, part_shape, part_shape),
        grid_spec=pltpu.PrefetchScalarGridSpec(
            num_scalar_prefetch=0,
            grid=(n_par, tiles_per_par),
            in_specs=[pl.BlockSpec((tm, n_lanes),
                                   lambda p, i: (p * tiles_per_par + i, 0))],
            out_specs=[part_spec, part_spec, part_spec, part_spec],
        ),
        compiler_params=pltpu.CompilerParams(
            dimension_semantics=("parallel", "arbitrary"),
            vmem_limit_bytes=vmem_limit),
    )(x2)

    # ---- tiny jnp epilogue: combine slices + lane-groups, exact mean, ----
    # ---- numerically-stable (pivot-shifted) variance ---------------------
    def _r(a):
        return a.reshape(n_par, groups, n_feat)

    pivr, sr, ssr, cntr = _r(piv), _r(s), _r(ss), _r(cnt)
    n_total = jnp.float32(m_rows)
    mean = (jnp.sum(cntr * pivr, axis=(0, 1)) + jnp.sum(sr, axis=(0, 1))) / n_total
    d = pivr - mean
    m2 = jnp.sum(ssr + 2.0 * d * sr + cntr * d * d, axis=(0, 1))
    var = jnp.maximum(m2 / n_total, 0.0)                    # biased var
    inv_std = jax.lax.rsqrt(var + EPS)
    scale = gamma_f * inv_std                               # (n_feat,)
    shift = beta_f - mean * scale
    scale_row = jnp.tile(scale.reshape(1, n_feat), (1, groups))
    shift_row = jnp.tile(shift.reshape(1, n_feat), (1, groups))

    # ---- pass 2: normalize ------------------------------------------------
    y2 = pl.pallas_call(
        _norm_kernel,
        out_shape=jax.ShapeDtypeStruct((mp, n_lanes), x2.dtype),
        grid_spec=pltpu.PrefetchScalarGridSpec(
            num_scalar_prefetch=0,
            grid=(n_tiles,),
            in_specs=[
                pl.BlockSpec((tm, n_lanes), lambda i: (i, 0)),   # x tiles
                pl.BlockSpec((1, n_lanes), lambda i: (0, 0)),    # scale (resident)
                pl.BlockSpec((1, n_lanes), lambda i: (0, 0)),    # shift (resident)
            ],
            out_specs=pl.BlockSpec((tm, n_lanes), lambda i: (i, 0)),
        ),
        compiler_params=pltpu.CompilerParams(
            dimension_semantics=("parallel",),       # both TCs on v7x
            vmem_limit_bytes=vmem_limit),
    )(x2, scale_row, shift_row)
    return y2


# ----------------------------------------------------------------------------
# Wrapper
# ----------------------------------------------------------------------------
def my_batch_norm(x, gamma, beta, *, path=None):
    """Matches MyBatchNorm.forward (training-mode batch statistics).

    path: None (auto), "fused" or "tiled" (mainly for testing).
    """
    if x.ndim == 2:
        m_rows, n_feat = x.shape
        x_flat = x
    elif x.ndim == 3:
        b, l, n_feat = x.shape
        m_rows = b * l
        x_flat = x.reshape(m_rows, n_feat)   # stats over (B, L) per feature
    else:
        raise ValueError("MyBatchNorm only supports 2D or 3D inputs")

    gamma_f = gamma.reshape(n_feat).astype(jnp.float32)
    beta_f = beta.reshape(n_feat).astype(jnp.float32)

    # Lane-dense repack: (M, N) -> (M/g, g*N) so output stores are unmasked
    # full-width vst; pad the row count if needed (masked in stats, clipped
    # from the output).
    groups = 1
    if n_feat < 128 and 128 % n_feat == 0:
        groups = 128 // n_feat
    pad_rows = (-m_rows) % groups
    if pad_rows:
        x_flat = jnp.concatenate(
            [x_flat, jnp.zeros((pad_rows, n_feat), x_flat.dtype)], axis=0)
    mp = (m_rows + pad_rows) // groups
    n_lanes = groups * n_feat
    x2 = x_flat.reshape(mp, n_lanes)

    # Fused single-pass path when the slab (plus in-kernel temporaries) fits
    # in VMEM; the threshold is generation-aware (64 MiB v7x vs 128 MiB v5e/v6e).
    vmem_budget = (_vmem_capacity_bytes() * 3) // 4
    slab_f32 = mp * n_lanes * 4
    use_fused = (8 * slab_f32 + (2 << 20)) <= vmem_budget
    if path == "fused":
        use_fused = True
    elif path == "tiled":
        use_fused = False

    if use_fused:
        gamma_row = jnp.tile(gamma_f.reshape(1, n_feat), (1, groups))
        beta_row = jnp.tile(beta_f.reshape(1, n_feat), (1, groups))
        y2 = _bn_fused(x2, gamma_row, beta_row, m_rows, groups, n_feat,
                       vmem_budget)
    else:
        y2 = _bn_tiled(x2, gamma_f, beta_f, m_rows, groups, n_feat)

    y_flat = y2.reshape(mp * groups, n_feat)
    if pad_rows:
        y_flat = y_flat[:m_rows]
    return y_flat.reshape(x.shape)


def _reference(x, gamma, beta):
    xf = x.astype(jnp.float32)
    axes = (0,) if x.ndim == 2 else (0, 1)
    mean = jnp.mean(xf, axis=axes, keepdims=True)
    var = jnp.mean((xf - mean) ** 2, axis=axes, keepdims=True)
    return ((xf - mean) * jax.lax.rsqrt(var + EPS) * gamma + beta).astype(x.dtype)


if __name__ == "__main__":
    key = jax.random.PRNGKey(0)
    keys = jax.random.split(key, 8)

    n_features = 32
    gamma = 1.0 + 0.1 * jax.random.normal(keys[0], (n_features,), dtype=jnp.float32)
    beta = 0.1 * jax.random.normal(keys[1], (n_features,), dtype=jnp.float32)

    def check(x, path=None, atol=1e-3, rtol=1e-3):
        y = jax.block_until_ready(my_batch_norm(x, gamma, beta, path=path))
        ref = _reference(x, gamma, beta)
        assert y.shape == x.shape and y.dtype == x.dtype
        assert jnp.allclose(y, ref, atol=atol, rtol=rtol), (x.shape, path)

    # Small module-typical shapes (fused VMEM-resident path).
    check(jax.random.normal(keys[2], (2, 8, n_features), dtype=jnp.float32))   # 3D
    check(jax.random.normal(keys[3], (16, n_features), dtype=jnp.float32))     # 2D

    # Large constant offset: exercises the numerically-stable variance.
    x_off = 100.0 + jax.random.normal(keys[4], (4, 1024, n_features), dtype=jnp.float32)
    check(x_off)
    check(x_off, path="tiled")

    # Multi-tile tiled path with two parallel stats slices (both TCs on v7x).
    x_big = jax.random.normal(keys[5], (8, 4096, n_features), dtype=jnp.float32)
    check(x_big, path="tiled")

    # Ragged final tile (odd tile count -> single stats slice).
    x_rag = jax.random.normal(keys[6], (1, 36000, n_features), dtype=jnp.float32)
    check(x_rag, path="tiled")

    # Row count not a multiple of the lane-pack factor -> padded + masked.
    x_pad = jax.random.normal(keys[7], (5, 7, n_features), dtype=jnp.float32)
    check(x_pad)
    check(x_pad, path="tiled")

    print("KERNEL_OK")
</pallas_src>

<mosaic_0001>
module attributes {stable_mosaic.version = 11 : i64} {
  func.func @fused_kernel(%arg0: memref<4x128xf32, #tpu.memory_space<vmem>>, %arg1: memref<1x128xf32, #tpu.memory_space<vmem>>, %arg2: memref<1x128xf32, #tpu.memory_space<vmem>>, %arg3: memref<4x128xf32, #tpu.memory_space<vmem>>) attributes {dimension_semantics = [], scalar_prefetch = 0 : i64, scratch_operands = 0 : i64, tpu.core_type = #tpu.core_type<tc>} {
    %c0 = arith.constant 0 : index
    %c0_0 = arith.constant 0 : index
    %0 = vector.load %arg0[%c0, %c0_0] : memref<4x128xf32, #tpu.memory_space<vmem>>, vector<4x128xf32>
    %cst = arith.constant dense<0.000000e+00> : vector<128xf32>
    %1 = vector.multi_reduction <add>, %0, %cst [0] : vector<4x128xf32> to vector<128xf32>
    %2 = vector.shape_cast %1 : vector<128xf32> to vector<1x128xf32>
    %c32_i32 = arith.constant 32 : i32
    %3 = tpu.dynamic_rotate %2 by %c32_i32 dim 1 : vector<1x128xf32>, i32 -> vector<1x128xf32>
    %4 = arith.addf %2, %3 : vector<1x128xf32>
    %c64_i32 = arith.constant 64 : i32
    %5 = tpu.dynamic_rotate %4 by %c64_i32 dim 1 : vector<1x128xf32>, i32 -> vector<1x128xf32>
    %6 = arith.addf %4, %5 : vector<1x128xf32>
    %cst_1 = arith.constant 6.250000e-02 : f32
    %7 = vector.broadcast %cst_1 : f32 to vector<1x128xf32>
    %8 = arith.mulf %6, %7 : vector<1x128xf32>
    %9 = vector.broadcast %8 : vector<1x128xf32> to vector<4x128xf32>
    %10 = arith.subf %0, %9 : vector<4x128xf32>
    %11 = arith.mulf %10, %10 : vector<4x128xf32>
    %cst_2 = arith.constant dense<0.000000e+00> : vector<128xf32>
    %12 = vector.multi_reduction <add>, %11, %cst_2 [0] : vector<4x128xf32> to vector<128xf32>
    %13 = vector.shape_cast %12 : vector<128xf32> to vector<1x128xf32>
    %c32_i32_3 = arith.constant 32 : i32
    %14 = tpu.dynamic_rotate %13 by %c32_i32_3 dim 1 : vector<1x128xf32>, i32 -> vector<1x128xf32>
    %15 = arith.addf %13, %14 : vector<1x128xf32>
    %c64_i32_4 = arith.constant 64 : i32
    %16 = tpu.dynamic_rotate %15 by %c64_i32_4 dim 1 : vector<1x128xf32>, i32 -> vector<1x128xf32>
    %17 = arith.addf %15, %16 : vector<1x128xf32>
    %cst_5 = arith.constant 6.250000e-02 : f32
    %18 = vector.broadcast %cst_5 : f32 to vector<1x128xf32>
    %19 = arith.mulf %17, %18 : vector<1x128xf32>
    %cst_6 = arith.constant 0.000000e+00 : f32
    %20 = vector.broadcast %cst_6 : f32 to vector<1x128xf32>
    %21 = arith.maximumf %19, %20 : vector<1x128xf32>
    %cst_7 = arith.constant 9.99999974E-6 : f32
    %22 = vector.broadcast %cst_7 : f32 to vector<1x128xf32>
    %23 = arith.addf %21, %22 : vector<1x128xf32>
    %24 = math.rsqrt %23 : vector<1x128xf32>
    %c0_8 = arith.constant 0 : index
    %c0_9 = arith.constant 0 : index
    %25 = vector.load %arg1[%c0_8, %c0_9] : memref<1x128xf32, #tpu.memory_space<vmem>>, vector<1x128xf32>
    %26 = arith.mulf %25, %24 : vector<1x128xf32>
    %c0_10 = arith.constant 0 : index
    %c0_11 = arith.constant 0 : index
    %27 = vector.load %arg2[%c0_10, %c0_11] : memref<1x128xf32, #tpu.memory_space<vmem>>, vector<1x128xf32>
    %28 = arith.mulf %8, %26 : vector<1x128xf32>
    %29 = arith.subf %27, %28 : vector<1x128xf32>
    %30 = vector.broadcast %26 : vector<1x128xf32> to vector<4x128xf32>
    %31 = arith.mulf %0, %30 : vector<4x128xf32>
    %32 = vector.broadcast %29 : vector<1x128xf32> to vector<4x128xf32>
    %33 = arith.addf %31, %32 : vector<4x128xf32>
    %c0_12 = arith.constant 0 : index
    %c0_13 = arith.constant 0 : index
    %34 = vector.load %arg3[%c0_12, %c0_13] : memref<4x128xf32, #tpu.memory_space<vmem>>, vector<4x128xf32>
    tpu.vector_store %arg3[%c0_12, %c0_13], %33 {strides = array<i32>} : memref<4x128xf32, #tpu.memory_space<vmem>>, vector<4x128xf32>,
    return
  }
}

</mosaic_0001>

<bundles_post_ra>
// kernel: tpu_custom_call.1
= control target key start
LH: loop header
LB: loop body
LE: loop exit
PB: predicated region body
PF: predicated region fallthrough
CT: control target
= control target key end

     0   :  { %8 = vsyncpa [#allocation3], 0  ;;  %s211_s0 = inlined_call_operand.hbm [shape: f32[4,128], index: 0, kind: input, shape index: {}]   ;;  %s212_s1 = inlined_call_operand.vmem [shape: f32[1,128], index: 1, kind: input, shape index: {}]   ;;  %s213_s2 = inlined_call_operand.vmem [shape: f32[1,128], index: 2, kind: input, shape index: {}]   ;;  %s214_s3 = inlined_call_operand.hbm [shape: f32[4,128], index: 3, kind: output, shape index: {}]  }
   0x1   :  { %9 = vsyncpa [#allocation4], 0  ;;  %s155_s12 = smov [#allocation2]   ;;  %s107_s16 = scalar_lea.hbm %s211_s0, 64 }
   0x2   :  { %s16_s13 = sshll.u32 %s155_s12, 4  ;;  %p108_p0 = scmp.ne.s32.totalorder %s211_s0, %s107_s16  ;;  %s17_s13 = int_to_ptr.vmem [resolvable:$true] %s16_s13 }
   0x3   :  { %p111_p1 = scmp.lt.u32.totalorder %s107_s16, %s211_s0 }
   0x5   :  { %p113_p2 = pnand %p111_p1, %p108_p0 }
   0x7   :  { %116 = shalt.err (!%p113_p2)
}
   0x8   :  { %s117_s21 = scalar_lea.vmem %s17_s13, 64  ;;  %p122_p4 = scmp.lt.s32.totalorder %s17_s13, %s17_s13 }
   0x9   :  { %p118_p3 = scmp.ne.s32.totalorder %s17_s13, %s117_s21  ;;  %p123_p5 = scmp.lt.s32.totalorder %s117_s21, %s117_s21 }
   0xb   :  { %p124_p6 = por %p123_p5, %p122_p4 }
   0xd   :  { %p125_p7 = pnand %p124_p6, %p118_p3 }
   0xf   :  { %128 = shalt.err (!%p125_p7)
}
  0x10   :  { %19 = dma.hbm_to_vmem [thread:$0]  %s211_s0, 64, %s17_s13, [#allocation3]  }
  0x11   :  { %151 = dma.done.wait [#allocation3], 64  }
  0x12   :  { %152 = vsyncadd [#allocation3], 4294967232  ;;  %vm28_vm0 = vcmask 1043456   ;;  %v27_v0 = vld [vmem:[#allocation2] sm:$0xf]  ;;  %s156_s24 = smov 32   ;;  %v43_v10 = vlaneseq }
  0x13   :  { %v29_v1 = vsel %vm28_vm0, %v27_v0, 0.0  ;;  %s157_s25 = smov 64   ;;  %v66_v33 = vld [vmem:[%s212_s1] sm:$0x1]  ;;  %s158_s29 = smov [#allocation5]  }
  0x14   :  { %v30_v2 = vrot.slane %v29_v1, 4  ;;  %v44_v11 = vshrl.u32 %v43_v10, 7  ;;  %v68_v36 = vld [vmem:[%s213_s2] sm:$0x1]  ;;  %s92_s30 = sshll.u32 %s158_s29, 4  ;;  %s93_s30 = int_to_ptr.vmem [resolvable:$true] %s92_s30 }
  0x15   :  { %s129_s4 = scalar_lea.vmem %s93_s30, 64  ;;  %p134_p9 = scmp.lt.s32.totalorder %s93_s30, %s93_s30 }
  0x16   :  { %v31_v3 = vadd.f32 %v30_v2, %v29_v1  ;;  %v45_v13 = vsub.s32 0, %v44_v11  ;;  %p130_p8 = scmp.ne.s32.totalorder %s93_s30, %s129_s4  ;;  %p135_p10 = scmp.lt.s32.totalorder %s129_s4, %s129_s4 }
  0x18   :  { %v32_v4 = vrot.slane %v31_v3, 2  ;;  %p136_p11 = por %p135_p10, %p134_p9 }
  0x1a   :  { %v33_v5 = vadd.f32 %v32_v4, %v31_v3  ;;  %p137_p12 = pnand %p136_p11, %p130_p8 }
  0x1c   :  { %v34_v6 = vrot.slane %v33_v5, 1 }
  0x1e   :  { %v35_v7 = vadd.f32 %v34_v6, %v33_v5 }
  0x20   :  { %36 = vrot.lane.b32.xlu0 %v35_v7, %s156_s24 }
  0x92   :  { %v37_v8 = vpop.permute.xlu0 %36 }
  0x93   :  { %v38_v9 = vadd.f32 %v37_v8, %v35_v7 }
  0x95   :  { %39 = vrot.lane.b32.xlu0 %v38_v9, %s157_s25 }
 0x107   :  { %v40_v12 = vpop.permute.xlu0 %39 }
 0x108   :  { %v41_v14 = vadd.f32 %v40_v12, %v38_v9 }
 0x10a   :  { %v42_v15 = vmul.f32 0.0625, %v41_v14 }
 0x10c   :  { %v46_v16 = vrot.slane %v42_v15, %v45_v13 }
 0x10e   :  { %v47_v17 = vsub.f32 %v27_v0, %v46_v16 }
 0x110   :  { %v48_v18 = vmul.f32 %v47_v17, %v47_v17 }
 0x112   :  { %v49_v19 = vsel %vm28_vm0, %v48_v18, 0.0 }
 0x113   :  { %v50_v20 = vrot.slane %v49_v19, 4 }
 0x115   :  { %v51_v21 = vadd.f32 %v50_v20, %v49_v19 }
 0x117   :  { %v52_v22 = vrot.slane %v51_v21, 2 }
 0x119   :  { %v53_v23 = vadd.f32 %v52_v22, %v51_v21 }
 0x11b   :  { %v54_v24 = vrot.slane %v53_v23, 1 }
 0x11d   :  { %v55_v25 = vadd.f32 %v54_v24, %v53_v23 }
 0x11f   :  { %56 = vrot.lane.b32.xlu1 %v55_v25, %s156_s24 }
 0x191   :  { %v57_v26 = vpop.permute.xlu1 %56 }
 0x192   :  { %v58_v27 = vadd.f32 %v57_v26, %v55_v25 }
 0x194   :  { %59 = vrot.lane.b32.xlu1 %v58_v27, %s157_s25 }
 0x206   :  { %v60_v28 = vpop.permute.xlu1 %59 }
 0x207   :  { %v61_v29 = vadd.f32 %v60_v28, %v58_v27 }
 0x209   :  { %v62_v30 = vmul.f32 0.0625, %v61_v29 }
 0x20b   :  { %v63_v31 = vmax.f32 %v62_v30, 0.0 }
 0x20d   :  { %v64_v32 = vadd.f32 1e-05, %v63_v31 }
 0x20f   :  { %105 = vrsqrt.f32 %v64_v32 }
 0x219   :  { %v106_v34 = vpop.eup %105 }
 0x21a   :  { %v67_v35 = vmul.f32 %v106_v34, %v66_v33 }
 0x21c   :  { %v69_v37 = vmul.f32 %v67_v35, %v42_v15  ;;  %v75_v38 = vrot.slane %v67_v35, %v45_v13 }
 0x21e   :  { %v70_v39 = vsub.f32 %v68_v36, %v69_v37  ;;  %v77_v40 = vmul.f32 %v75_v38, %v27_v0 }
 0x220   :  { %v82_v41 = vrot.slane %v70_v39, %v45_v13 }
 0x222   :  { %v84_v42 = vadd.f32 %v82_v41, %v77_v40 }
 0x224   :  { %85 = vst [vmem:[#allocation5] sm:$0xf] %v84_v42 }
 0x225   :  { %140 = shalt.err (!%p137_p12)
}
 0x226   :  { %s141_s2 = scalar_lea.hbm %s214_s3, 64 }
 0x227   :  { %p142_p13 = scmp.ne.s32.totalorder %s214_s3, %s141_s2  ;;  %p145_p0 = scmp.lt.u32.totalorder %s141_s2, %s214_s3 }
 0x229   :  { %p147_p1 = pnand %p145_p0, %p142_p13 }
 0x22b   :  { %150 = shalt.err (!%p147_p1)
}
 0x22c   :  { %95 = dma.vmem_to_hbm [thread:$0]  %s93_s30, 64, %s214_s3, [#allocation4]  }
 0x22d   :  { %153 = dma.done.wait [#allocation4], 64  }
 0x22e   :  { %154 = vsyncadd [#allocation4], 4294967232 }
 0x22f   :  { %99 = vsyncpa [#allocation3], 1 }
 0x230   :  { %100 = vsyncpa [#allocation4], 1 }

</bundles_post_ra>
